<compile_context>
chip_gen: v7x
topology: tpu7x:2x2x1
jax: 0.10.0
libtpu: 0.0.40
codegen_flags: <defaults>
</compile_context>

<pallas_src>
import functools

import jax
import jax.numpy as jnp
from jax.experimental import pallas as pl
from jax.experimental.pallas import tpu as pltpu

D_MODEL = 768   # encoder hidden size (fixed by hash_layer: Linear(768,1024))
D_HASH = 1024   # hash_layer intermediate size


# ----------------------------------------------------------------------------
# Kernel 1: GraphCodeBERT node->token averaging + blend
#   nodes_mask  = position_idx == 0
#   token_mask  = position_idx >= 2
#   m           = (nodes_mask[:, :, None] & token_mask[:, None, :] & attn_mask)
#   m           = m / (m.sum(-1) + 1e-10)[:, :, None]
#   avg         = einsum('abc,acd->abd', m, emb)
#   out         = where(nodes_mask, avg, emb)
#
# Grid is (B//Bt, S//TQ): Bt batch rows per step (amortizes the ~0.35us/step
# pipeline overhead at small S), TQ query rows per step (keeps VMEM bounded at
# large S so the kernel also fits v7x's 64 MiB VMEM).
# ----------------------------------------------------------------------------
def _blend_kernel(pos_col_ref, pos_row_ref, attn_ref, emb_ref, out_ref, *, tq):
    # pos_col_ref: (Bt, TQ, 1) int32   pos_row_ref: (Bt, 1, S) int32
    # attn_ref:    (Bt, TQ, S) int8    emb_ref: (Bt, S, D) f32
    # out_ref:     (Bt, TQ, D) f32
    nodes_col = pos_col_ref[...] == 0            # (Bt, TQ, 1) bool (nodes_mask)
    tokens_row = pos_row_ref[...] >= 2           # (Bt, 1, S)  bool (token_mask)
    attn_b = attn_ref[...] != 0                  # (Bt, TQ, S) bool

    mask = nodes_col & tokens_row & attn_b       # (Bt, TQ, S)
    m_f32 = mask.astype(jnp.float32)
    denom = jnp.sum(m_f32, axis=-1, keepdims=True) + 1e-10     # (Bt, TQ, 1)
    inv = pl.reciprocal(denom, approx=True)                    # EUP slot (free)

    # 0/1 weights are exact in bf16; accumulate in f32 on the MXU, then apply
    # the row normalization to the (TQ, D) result (linear, so equivalent).
    emb_bf = emb_ref[...].astype(jnp.bfloat16)                 # (Bt, S, D)
    avg = jnp.einsum('bqk,bkd->bqd', mask.astype(jnp.bfloat16), emb_bf,
                     preferred_element_type=jnp.float32)       # (Bt, TQ, D)
    avg = avg * inv

    # Pass-through embeddings for this query tile (sliced from the resident
    # full-S block; zero extra DMA).
    q0 = pl.multiple_of(pl.program_id(1) * tq, tq)
    emb_q = emb_ref[:, pl.ds(q0, tq), :]                       # (Bt, TQ, D)

    out_ref[...] = jnp.where(nodes_col, avg, emb_q)            # single vselect


def blend_embeddings(position_idx, attn_mask, emb, *, max_tq=256):
    B, S = position_idx.shape
    D = emb.shape[-1]

    # Small S: keep the full row axis and pack several batch rows per step.
    # Large S: tile the query-row axis so (Bt, TQ, S) blocks stay VMEM-friendly.
    if S <= 512:
        tq = S
        bt = next(c for c in (8, 4, 2, 1) if B % c == 0)
    else:
        bt = 1
        tq = max_tq if (S % max_tq == 0 and max_tq % 8 == 0) else S

    pos_col = position_idx[:, :, None].astype(jnp.int32)   # (B, S, 1)
    pos_row = position_idx[:, None, :].astype(jnp.int32)   # (B, 1, S)
    attn = attn_mask.astype(jnp.int8)                      # (B, S, S) int8
    emb = emb.astype(jnp.float32)

    kern = functools.partial(_blend_kernel, tq=tq)
    return pl.pallas_call(
        kern,
        out_shape=jax.ShapeDtypeStruct((B, S, D), jnp.float32),
        grid=(B // bt, S // tq),
        in_specs=[
            pl.BlockSpec((bt, tq, 1), lambda b, q: (b, q, 0)),
            pl.BlockSpec((bt, 1, S), lambda b, q: (b, 0, 0)),
            pl.BlockSpec((bt, tq, S), lambda b, q: (b, q, 0)),
            pl.BlockSpec((bt, S, D), lambda b, q: (b, 0, 0)),
        ],
        out_specs=pl.BlockSpec((bt, tq, D), lambda b, q: (b, q, 0)),
        compiler_params=pltpu.CompilerParams(
            dimension_semantics=("parallel", "parallel")),
    )(pos_col, pos_row, attn, emb)


# ----------------------------------------------------------------------------
# Kernel 2: fused [encoder CLS pooler] + hash_layer + tanh(x * hash_scale)
#   pooled = tanh(cls @ Wp + bp)                (RoBERTa pooler, output [1])
#   h      = pooled @ W1 + b1                   (Linear(768, 1024))
#   r      = h @ W2 + b2                        (Linear(1024, 768))
#   out    = tanh(r * hash_scale)   [optionally sign(out)]
# Weights are streamed as bf16 (halves the dominant HBM DMA), biases stay f32,
# accumulation is f32 via preferred_element_type.
# ----------------------------------------------------------------------------
def _pooler_hash_kernel(scale_ref, cls_ref, wp_ref, bp_ref, w1_ref, b1_ref,
                        w2_ref, b2_ref, out_ref, *, retrieval_model):
    scale = scale_ref[0]
    cls_bf = cls_ref[...].astype(jnp.bfloat16)
    pooled = jnp.tanh(
        jnp.dot(cls_bf, wp_ref[...], preferred_element_type=jnp.float32)
        + bp_ref[...])
    h = jnp.dot(pooled.astype(jnp.bfloat16), w1_ref[...],
                preferred_element_type=jnp.float32) + b1_ref[...]
    r = jnp.dot(h.astype(jnp.bfloat16), w2_ref[...],
                preferred_element_type=jnp.float32) + b2_ref[...]
    y = jnp.tanh(r * scale)
    if retrieval_model:
        y = jnp.sign(y)
    out_ref[...] = y


def pooler_hash(cls_vec, params, hash_scale, retrieval_model=False):
    B = cls_vec.shape[0]
    kern = functools.partial(_pooler_hash_kernel,
                             retrieval_model=retrieval_model)
    scale = jnp.asarray([hash_scale], dtype=jnp.float32)
    vmem = pl.BlockSpec(memory_space=pltpu.MemorySpace.VMEM)
    smem = pl.BlockSpec(memory_space=pltpu.MemorySpace.SMEM)
    # bf16 weights: ~4.3 MiB total -> fits the default scoped VMEM on every
    # generation (incl. v7x's 64 MiB physical VMEM); no vmem_limit override.
    return pl.pallas_call(
        kern,
        out_shape=jax.ShapeDtypeStruct((B, D_MODEL), jnp.float32),
        in_specs=[smem] + [vmem] * 7,
        out_specs=vmem,
    )(scale, cls_vec.astype(jnp.float32),
      params["wp"], params["bp"], params["w1"],
      params["b1"], params["w2"], params["b2"])


# ----------------------------------------------------------------------------
# Model.forward equivalent
# ----------------------------------------------------------------------------
def model_forward(params, code_inputs=None, attn_mask=None, position_idx=None,
                  nl_inputs=None, hash_scale=1.0, retrieval_model=False):
    if code_inputs is not None:
        # encoder.embeddings.word_embeddings(code_inputs)  (glue gather)
        emb = params["word_embeddings"][code_inputs]
        emb = blend_embeddings(position_idx, attn_mask, emb)
        # TODO(synk): the full RoBERTa transformer layer stack of `encoder` is
        # not implemented; the encoder is approximated by word-embeddings +
        # the CLS pooler (dense + tanh), i.e. encoder(...)[1].
        cls = emb[:, 0, :]
        return pooler_hash(cls, params, hash_scale, retrieval_model)
    else:
        emb = params["word_embeddings"][nl_inputs]
        # nl path: attention_mask = nl_inputs.ne(1) is unused by the
        # simplified encoder stand-in (see TODO above).
        cls = emb[:, 0, :]
        return pooler_hash(cls, params, hash_scale, retrieval_model)


def init_params(key, vocab_size):
    ks = jax.random.split(key, 7)
    scale = 0.02
    return {
        # embeddings + biases stay f32; matmul weights stored bf16 (streamed
        # straight to the MXU without a per-call cast).
        "word_embeddings": scale * jax.random.normal(
            ks[0], (vocab_size, D_MODEL), jnp.float32),
        "wp": (scale * jax.random.normal(
            ks[1], (D_MODEL, D_MODEL), jnp.float32)).astype(jnp.bfloat16),
        "bp": scale * jax.random.normal(ks[2], (1, D_MODEL), jnp.float32),
        "w1": (scale * jax.random.normal(
            ks[3], (D_MODEL, D_HASH), jnp.float32)).astype(jnp.bfloat16),
        "b1": scale * jax.random.normal(ks[4], (1, D_HASH), jnp.float32),
        "w2": (scale * jax.random.normal(
            ks[5], (D_HASH, D_MODEL), jnp.float32)).astype(jnp.bfloat16),
        "b2": scale * jax.random.normal(ks[6], (1, D_MODEL), jnp.float32),
    }


if __name__ == "__main__":
    B, S, V = 2, 16, 128
    key = jax.random.PRNGKey(0)
    k_par, k_code, k_pos, k_attn = jax.random.split(key, 4)

    params = init_params(k_par, V)

    code_inputs = jax.random.randint(k_code, (B, S), 0, V, dtype=jnp.int32)
    # position_idx: 0 -> graph node, 1 -> pad/special, >=2 -> code token
    position_idx = jax.random.randint(k_pos, (B, S), 0, 4, dtype=jnp.int32)
    attn_mask = jax.random.bernoulli(k_attn, 0.8, (B, S, S))
    hash_scale = 1.0

    out = model_forward(params, code_inputs=code_inputs, attn_mask=attn_mask,
                        position_idx=position_idx, hash_scale=hash_scale,
                        retrieval_model=False)
    out = jax.block_until_ready(out)
    assert out.shape == (B, D_MODEL) and out.dtype == jnp.float32
    print("KERNEL_OK")
</pallas_src>

<mosaic_0001>
module attributes {stable_mosaic.version = 11 : i64} {
  func.func @_blend_kernel(%arg0: i32, %arg1: i32, %arg2: memref<2x16x1xi32, #tpu.memory_space<vmem>>, %arg3: memref<2x1x16xi32, #tpu.memory_space<vmem>>, %arg4: memref<2x16x16xi8, #tpu.memory_space<vmem>>, %arg5: memref<2x16x768xf32, #tpu.memory_space<vmem>>, %arg6: memref<2x16x768xf32, #tpu.memory_space<vmem>>) attributes {dimension_semantics = [#tpu.dimension_semantics<parallel>, #tpu.dimension_semantics<parallel>], iteration_bounds = array<i64: 1, 1>, scalar_prefetch = 0 : i64, scratch_operands = 0 : i64, tpu.core_type = #tpu.core_type<tc>, window_params = [{transform_indices = @transform_0, window_bounds = array<i64: 2, 16, 1>}, {transform_indices = @transform_1, window_bounds = array<i64: 2, 1, 16>}, {transform_indices = @transform_2, window_bounds = array<i64: 2, 16, 16>}, {transform_indices = @transform_3, window_bounds = array<i64: 2, 16, 768>}, {transform_indices = @transform_4, window_bounds = array<i64: 2, 16, 768>}]} {
    %c0 = arith.constant 0 : index
    %c0_0 = arith.constant 0 : index
    %c0_1 = arith.constant 0 : index
    %0 = vector.load %arg2[%c0, %c0_0, %c0_1] : memref<2x16x1xi32, #tpu.memory_space<vmem>>, vector<2x16x1xi32>
    %c0_i32 = arith.constant 0 : i32
    %1 = vector.broadcast %c0_i32 : i32 to vector<2x16x1xi32>
    %2 = arith.cmpi eq, %0, %1 : vector<2x16x1xi32>
    %c0_2 = arith.constant 0 : index
    %c0_3 = arith.constant 0 : index
    %c0_4 = arith.constant 0 : index
    %3 = vector.load %arg3[%c0_2, %c0_3, %c0_4] : memref<2x1x16xi32, #tpu.memory_space<vmem>>, vector<2x1x16xi32>
    %c2_i32 = arith.constant 2 : i32
    %4 = vector.broadcast %c2_i32 : i32 to vector<2x1x16xi32>
    %5 = arith.cmpi sge, %3, %4 : vector<2x1x16xi32>
    %c0_5 = arith.constant 0 : index
    %c0_6 = arith.constant 0 : index
    %c0_7 = arith.constant 0 : index
    %6 = vector.load %arg4[%c0_5, %c0_6, %c0_7] : memref<2x16x16xi8, #tpu.memory_space<vmem>>, vector<2x16x16xi8>
    %c0_i8 = arith.constant 0 : i8
    %7 = vector.broadcast %c0_i8 : i8 to vector<2x16x16xi8>
    %8 = arith.cmpi ne, %6, %7 : vector<2x16x16xi8>
    %9 = vector.broadcast %2 : vector<2x16x1xi1> to vector<2x16x16xi1>
    %10 = vector.broadcast %5 : vector<2x1x16xi1> to vector<2x16x16xi1>
    %11 = arith.andi %9, %10 : vector<2x16x16xi1>
    %12 = arith.andi %11, %8 : vector<2x16x16xi1>
    %13 = arith.extui %12 : vector<2x16x16xi1> to vector<2x16x16xi32>
    %14 = arith.sitofp %13 : vector<2x16x16xi32> to vector<2x16x16xf32>
    %cst = arith.constant dense<0.000000e+00> : vector<2x16xf32>
    %15 = vector.multi_reduction <add>, %14, %cst [2] : vector<2x16x16xf32> to vector<2x16xf32>
    %16 = vector.shape_cast %15 : vector<2x16xf32> to vector<2x16x1xf32>
    %cst_8 = arith.constant 1.000000e-10 : f32
    %17 = vector.broadcast %cst_8 : f32 to vector<2x16x1xf32>
    %18 = arith.addf %16, %17 : vector<2x16x1xf32>
    %19 = tpu.reciprocal %18 {approx = true} : vector<2x16x1xf32> -> vector<2x16x1xf32>
    %c0_9 = arith.constant 0 : index
    %c0_10 = arith.constant 0 : index
    %c0_11 = arith.constant 0 : index
    %20 = vector.load %arg5[%c0_9, %c0_10, %c0_11] : memref<2x16x768xf32, #tpu.memory_space<vmem>>, vector<2x16x768xf32>
    %21 = arith.truncf %20 : vector<2x16x768xf32> to vector<2x16x768xbf16>
    %22 = arith.extui %12 : vector<2x16x16xi1> to vector<2x16x16xi32>
    %23 = arith.sitofp %22 : vector<2x16x16xi32> to vector<2x16x16xf32>
    %24 = arith.truncf %23 : vector<2x16x16xf32> to vector<2x16x16xbf16>
    "tpu.trace_start"() <{level = 10 : i32, message = "bqk,bkd->bqd"}> : () -> ()
    %cst_12 = arith.constant dense<0.000000e+00> : vector<2x16x768xf32>
    %25 = tpu.matmul %24, %21, %cst_12 {dimension_numbers = #tpu.dot_dimension_numbers<[2], [1], [1], [2], [0, 0, 0, 1, 1, 2], [0], [0]>} : vector<2x16x16xbf16>, vector<2x16x768xbf16>, vector<2x16x768xf32> -> vector<2x16x768xf32>
    "tpu.trace_stop"() : () -> ()
    %26 = vector.broadcast %19 : vector<2x16x1xf32> to vector<2x16x768xf32>
    %27 = arith.mulf %25, %26 : vector<2x16x768xf32>
    %c16_i32 = arith.constant 16 : i32
    %28 = arith.muli %arg1, %c16_i32 : i32
    %29 = tpu.assume_multiple %28, 16 : i32
    %c0_13 = arith.constant 0 : index
    %30 = arith.index_cast %29 : i32 to index
    %c0_14 = arith.constant 0 : index
    %31 = vector.load %arg5[%c0_13, %30, %c0_14] : memref<2x16x768xf32, #tpu.memory_space<vmem>>, vector<2x16x768xf32>
    %32 = vector.shape_cast %2 : vector<2x16x1xi1> to vector<2x16x1xi1>
    %33 = vector.broadcast %32 : vector<2x16x1xi1> to vector<2x16x768xi1>
    %34 = arith.select %33, %27, %31 : vector<2x16x768xi1>, vector<2x16x768xf32>
    %c0_15 = arith.constant 0 : index
    %c0_16 = arith.constant 0 : index
    %c0_17 = arith.constant 0 : index
    %35 = vector.load %arg6[%c0_15, %c0_16, %c0_17] : memref<2x16x768xf32, #tpu.memory_space<vmem>>, vector<2x16x768xf32>
    tpu.vector_store %arg6[%c0_15, %c0_16, %c0_17], %34 {strides = array<i32>} : memref<2x16x768xf32, #tpu.memory_space<vmem>>, vector<2x16x768xf32>,
    return
  }
  func.func @transform_0(%arg0: i32, %arg1: i32) -> (i32, i32, i32) {
    %c0_i32 = arith.constant 0 : i32
    %c0_i32_0 = arith.constant 0 : i32
    return %arg0, %arg1, %c0_i32 : i32, i32, i32
  }
  func.func @transform_1(%arg0: i32, %arg1: i32) -> (i32, i32, i32) {
    %c0_i32 = arith.constant 0 : i32
    %c0_i32_0 = arith.constant 0 : i32
    %c0_i32_1 = arith.constant 0 : i32
    return %arg0, %c0_i32, %c0_i32_0 : i32, i32, i32
  }
  func.func @transform_2(%arg0: i32, %arg1: i32) -> (i32, i32, i32) {
    %c0_i32 = arith.constant 0 : i32
    %c0_i32_0 = arith.constant 0 : i32
    return %arg0, %arg1, %c0_i32 : i32, i32, i32
  }
  func.func @transform_3(%arg0: i32, %arg1: i32) -> (i32, i32, i32) {
    %c0_i32 = arith.constant 0 : i32
    %c0_i32_0 = arith.constant 0 : i32
    %c0_i32_1 = arith.constant 0 : i32
    return %arg0, %c0_i32, %c0_i32_0 : i32, i32, i32
  }
  func.func @transform_4(%arg0: i32, %arg1: i32) -> (i32, i32, i32) {
    %c0_i32 = arith.constant 0 : i32
    %c0_i32_0 = arith.constant 0 : i32
    return %arg0, %arg1, %c0_i32 : i32, i32, i32
  }
}

</mosaic_0001>

<bundles_post_ra>
// kernel: tpu_custom_call.1
= control target key start
LH: loop header
LB: loop body
LE: loop exit
PB: predicated region body
PF: predicated region fallthrough
CT: control target
= control target key end

     0   :  { %9 = vsyncpa [#allocation3], 0  ;;  %s938_s0 = inlined_call_operand.vmem [shape: s32[2,16,1], index: 0, kind: input, shape index: {}]   ;;  %s939_s1 = inlined_call_operand.vmem [shape: s32[2,1,16], index: 1, kind: input, shape index: {}]   ;;  %s940_s2 = inlined_call_operand.vmem [shape: s8[2,16,16], index: 2, kind: input, shape index: {}]   ;;  %s941_s3 = inlined_call_operand.hbm [shape: f32[2,16,768], index: 3, kind: input, shape index: {}]   ;;  %s942_s4 = inlined_call_operand.hbm [shape: f32[2,16,768], index: 4, kind: output, shape index: {}]  }
   0x1   :  { %10 = vsyncpa [#allocation4], 0  ;;  %s633_s15 = smov [#allocation2]   ;;  %s585_s19 = scalar_lea.hbm %s941_s3, 3072 }
   0x2   :  { %s22_s16 = sshll.u32 %s633_s15, 4  ;;  %p586_p0 = scmp.ne.s32.totalorder %s941_s3, %s585_s19  ;;  %s23_s16 = int_to_ptr.vmem [resolvable:$true] %s22_s16 }
   0x3   :  { %p589_p1 = scmp.lt.u32.totalorder %s585_s19, %s941_s3 }
   0x5   :  { %p591_p2 = pnand %p589_p1, %p586_p0 }
   0x7   :  { %594 = shalt.err (!%p591_p2)
}
   0x8   :  { %s595_s24 = scalar_lea.vmem %s23_s16, 3072  ;;  %p600_p4 = scmp.lt.s32.totalorder %s23_s16, %s23_s16 }
   0x9   :  { %p596_p3 = scmp.ne.s32.totalorder %s23_s16, %s595_s24  ;;  %p601_p5 = scmp.lt.s32.totalorder %s595_s24, %s595_s24 }
   0xb   :  { %p602_p6 = por %p601_p5, %p600_p4 }
   0xd   :  { %p603_p7 = pnand %p602_p6, %p596_p3 }
   0xf   :  { %606 = shalt.err (!%p603_p7)
}
  0x10   :  { %s634_s25 = smov 768   ;;  %s635_s26 = smov 48  }
  0x11   :  { %28 = dma.hbm_to_vmem [thread:$0]  %s941_s3, 3072, %s23_s16, [#allocation3], %s634_s25, %s634_s25, %s635_s26  }
  0x12   :  { %629 = dma.done.wait [#allocation3], 3072  }
  0x13   :  { %630 = vsyncadd [#allocation3], 4294964224  ;;  %v636_v0 = vmov 0   ;;  %v35_v1 = vld [vmem:[%s938_s0] sm:$0xff]  ;;  %v37_v2 = vld [vmem:[%s938_s0 + $0x10] sm:$0xff]  ;;  %v77_v27 = vlaneseq  ;;  %v637_v52 = vmov 0.0  }
  0x14   :  { %575 = vset.pattern.permute.xlu0 %v636_v0  ;;  %576 = vset.pattern.permute.xlu1 %v636_v0  ;;  %v36_v3 = vld [vmem:[%s938_s0 + $0x8] sm:$0xff]  ;;  %vm39_vm0 = vcmp.eq.s32.totalorder %v35_v1, 0  ;;  %vm41_vm1 = vcmp.eq.s32.totalorder %v37_v2, 0  ;;  %v38_v4 = vld [vmem:[%s938_s0 + $0x18] sm:$0xff]  ;;  %v709_v14 = vld [vmem:[#allocation2] sm:$0xff] }
  0x15   :  { %209 = vmatprep.mubr.bf16.mxu0 %v636_v0  ;;  %252 = vmatprep.mubr.bf16.mxu1 %v636_v0  ;;  %vm40_vm2 = vcmp.eq.s32.totalorder %v36_v3, 0  ;;  %v55_v5 = vsel %vm39_vm0, 1, %v636_v0  ;;  %v57_v6 = vsel %vm41_vm1, 1, %v636_v0  ;;  %vm42_vm3 = vcmp.eq.s32.totalorder %v38_v4, 0  ;;  %v699_v9 = vld [vmem:[#allocation2 + $0x8] sm:$0xff]  ;;  %v701_v10 = vld [vmem:[#allocation2 + $0x38] sm:$0xff] }
  0x16   :  { %60 = vperm.xlu0 %575, %v55_v5   ;;  %66 = vperm.xlu1 %576, %v57_v6   ;;  %v56_v7 = vsel %vm40_vm2, 1, %v636_v0  ;;  %v58_v8 = vsel %vm42_vm3, 1, %v636_v0  ;;  %v703_v11 = vld [vmem:[#allocation2 + $0x18] sm:$0xff]  ;;  %v161_v12 = vpack.c.bf16 %v701_v10, %v699_v9  ;;  %v707_v13 = vld [vmem:[#allocation2 + $0x48] sm:$0xff]  ;;  %v711_v15 = vld [vmem:[#allocation2 + $0x30] sm:$0xff]  ;;  %v78_v30 = vshrl.u32 %v77_v27, 7 }
  0x17   :  { %v163_v16 = vpack.c.bf16 %v707_v13, %v703_v11  ;;  %v160_v17 = vpack.c.bf16 %v711_v15, %v709_v14  ;;  %v717_v18 = vld [vmem:[#allocation2 + $0x10] sm:$0xff]  ;;  %v719_v19 = vld [vmem:[#allocation2 + $0x40] sm:$0xff]  ;;  %v721_v20 = vld [vmem:[#allocation2 + $0x28] sm:$0xff]  ;;  %vm115_vm0 = vcmask 130048  }
  0x18   :  { %177 = vmatprep.subr.bf16.mxu0 %v161_v12  ;;  %v162_v21 = vpack.c.bf16 %v719_v19, %v717_v18  ;;  %v725_v22 = vld [vmem:[#allocation2 + $0x58] sm:$0xff]  ;;  %v727_v23 = vld [vmem:[#allocation2 + $0x68] sm:$0xff]  ;;  %v43_v28 = vld [vmem:[%s939_s1] sm:$0x1]  ;;  %v79_v33 = vsub.s32 0, %v78_v30 }
  0x19   :  { %v729_v24 = vld [vmem:[#allocation2 + $0x98] sm:$0xff]  ;;  %220 = vmatprep.subr.bf16.mxu1 %v163_v16  ;;  %178 = vmatpush1.bf16.msra.mxu0 %v160_v17  ;;  %v165_v25 = vpack.c.bf16 %v725_v22, %v721_v20  ;;  %v47_v29 = vld [vmem:[%s940_s2] sm:$0x3]  ;;  %vm45_vm4 = vcmp.ge.s32.totalorder %v43_v28, 2  ;;  %v49_v32 = vld [vmem:[%s940_s2 + $0x4] sm:$0x3] }
  0x1a   :  { %63 = vperm.xlu0 %575, %v56_v7   ;;  %69 = vperm.xlu1 %576, %v58_v8   ;;  %v167_v26 = vpack.c.bf16 %v729_v24, %v727_v23  ;;  %v44_v31 = vld [vmem:[%s939_s1 + $0x1] sm:$0x1]  ;;  %vm51_vm5 = vnez %v47_v29  ;;  %v48_v34 = vld [vmem:[%s940_s2 + $0x2] sm:$0x3]  ;;  %v75_v35 = vsel %vm45_vm4, 1, %v636_v0  ;;  %vm53_vm7 = vnez %v49_v32  ;;  %v783_v56 = vld [vmem:[#allocation2 + $0x20] sm:$0xff] }
  0x1b   :  { %221 = vmatpush1.bf16.msra.mxu1 %v162_v21  ;;  %263 = vmatprep.subr.bf16.mxu0 %v165_v25  ;;  %vm46_vm6 = vcmp.ge.s32.totalorder %v44_v31, 2  ;;  %v91_v36 = vsel %vm51_vm5, 16843009, %v636_v0  ;;  %v50_v37 = vld [vmem:[%s940_s2 + $0x6] sm:$0x3]  ;;  %vm52_vm8 = vnez %v48_v34  ;;  %v80_v39 = vrot.slane %v75_v35, %v79_v33  ;;  %v792_v59 = vld [vmem:[#allocation2 + $0x60] sm:$0xff] }
  0x1c   :  { %309 = vmatprep.subr.bf16.mxu1 %v167_v26  ;;  %v76_v38 = vsel %vm46_vm6, 1, %v636_v0  ;;  %v93_v40 = vsel %vm53_vm7, 16843009, %v636_v0  ;;  %v95_v41 = vunpack.c.0.s8 %v91_v36  ;;  %vm54_vm9 = vnez %v50_v37  ;;  %v785_v57 = vld [vmem:[#allocation2 + $0x50] sm:$0xff]  ;;  %v806_v1 = vld [vmem:[#allocation2 + $0x78] sm:$0xff]  ;;  %v808_v2 = vld [vmem:[#allocation2 + $0xa8] sm:$0xff] }
  0x1d   :  { %v84_v42 = vrot.slane %v76_v38, %v79_v33  ;;  %v92_v43 = vsel %vm52_vm8, 16843009, %v636_v0  ;;  %v97_v44 = vunpack.c.0.s8 %v93_v40  ;;  %vm85_vm10 = vcmp.eq.s32.totalorder %v80_v39, 1  ;;  %v794_v60 = vld [vmem:[#allocation2 + $0x90] sm:$0xff]  ;;  %v817_v6 = vld [vmem:[#allocation2 + $0x88] sm:$0xff]  ;;  %v819_v7 = vld [vmem:[#allocation2 + $0xb8] sm:$0xff] }
  0x1e   :  { %v94_v45 = vsel %vm54_vm9, 16843009, %v636_v0  ;;  %vm99_vm11 = vcmp.ne.s32.totalorder %v95_v41, 0  ;;  %v96_v48 = vunpack.c.0.s8 %v92_v43  ;;  %v164_v4 = vpack.c.bf16 %v785_v57, %v783_v56  ;;  %v831_v26 = vld [vmem:[#allocation2 + $0x70] sm:$0xff]  ;;  %v835_v27 = vld [vmem:[#allocation2 + $0xa0] sm:$0xff]  ;;  %s638_s1 = smov [#allocation5]  }
  0x1f   :  { %vm86_vm14 = vcmp.eq.s32.totalorder %v84_v42, 1  ;;  %vm768_vm1 = vcmp.ne.s32.totalorder %v97_v44, 0  ;;  %v98_v50 = vunpack.c.0.s8 %v94_v45  ;;  %v166_v5 = vpack.c.bf16 %v794_v60, %v792_v59  ;;  %v837_v28 = vld [vmem:[#allocation2 + $0x80] sm:$0xff]  ;;  %v839_v29 = vld [vmem:[#allocation2 + $0xb0] sm:$0xff]  ;;  %s545_s2 = sshll.u32 %s638_s1, 4  ;;  %s546_s2 = int_to_ptr.vmem [resolvable:$true] %s545_s2 }
  0x20   :  { %vm779_vm4 = vcmp.ne.s32.totalorder %v96_v48, 0  ;;  %v169_v17 = vpack.c.bf16 %v808_v2, %v806_v1  ;;  %v171_v25 = vpack.c.bf16 %v819_v7, %v817_v6  ;;  %v168_v30 = vpack.c.bf16 %v835_v27, %v831_v26  ;;  %s607_s21 = scalar_lea.vmem %s546_s2, 3072  ;;  %p612_p9 = scmp.lt.s32.totalorder %s546_s2, %s546_s2 }
  0x21   :  { %vm799_vm9 = vcmp.ne.s32.totalorder %v98_v50, 0  ;;  %v170_v31 = vpack.c.bf16 %v839_v29, %v837_v28  ;;  %p608_p8 = scmp.ne.s32.totalorder %s546_s2, %s607_s21  ;;  %p613_p10 = scmp.lt.s32.totalorder %s607_s21, %s607_s21 }
  0x23   :  { %p614_p11 = por %p613_p10, %p612_p9 }
  0x25   :  { %p615_p12 = pnand %p614_p11, %p608_p8 }
  0x95   :  { %v759_v46 = vpop.permute.xlu0 %60  ;;  %v761_v47 = vpop.permute.xlu1 %66 }
  0x96   :  { %vm71_vm12 = vcmp.eq.s32.totalorder %v759_v46, 1  ;;  %vm73_vm13 = vcmp.eq.s32.totalorder %v761_v47, 1 }
  0x97   :  { %vm87_vm15 = vmand %vm71_vm12, %vm85_vm10 }
  0x98   :  { %vm103_vm2 = vmand %vm87_vm15, %vm99_vm11 }
  0x99   :  { %v772_v51 = vpop.permute.xlu0 %63  ;;  %v559_v53 = vsel %vm103_vm2, 1.0, %v637_v52  ;;  %v774_v54 = vpop.permute.xlu1 %69  ;;  %vm89_vm3 = vmand %vm73_vm13, %vm86_vm14 }
  0x9a   :  { %vm72_vm5 = vcmp.eq.s32.totalorder %v772_v51, 1  ;;  %v116_v58 = vsel %vm115_vm0, %v559_v53, 0.0  ;;  %vm74_vm6 = vcmp.eq.s32.totalorder %v774_v54, 1  ;;  %vm105_vm7 = vmand %vm89_vm3, %vm768_vm1 }
  0x9b   :  { %117 = vadd.xlane.f32.xlu0 %v116_v58  ;;  %v561_v61 = vsel %vm105_vm7, 1.0, %v637_v52  ;;  %vm88_vm8 = vmand %vm72_vm5, %vm85_vm10 }
  0x9c   :  { %v122_v63 = vsel %vm115_vm0, %v561_v61, 0.0  ;;  %vm104_vm11 = vmand %vm88_vm8, %vm779_vm4 }
  0x9d   :  { %v560_v3 = vsel %vm104_vm11, 1.0, %v637_v52  ;;  %vm90_vm10 = vmand %vm74_vm6, %vm86_vm14 }
  0x9e   :  { %v119_v8 = vsel %vm115_vm0, %v560_v3, 0.0  ;;  %v172_v12 = vpack.c.bf16 %v560_v3, %v559_v53  ;;  %vm106_vm15 = vmand %vm90_vm10, %vm799_vm9 }
  0x9f   :  { %123 = vadd.xlane.f32.xlu0 %v122_v63  ;;  %120 = vadd.xlane.f32.xlu1 %v119_v8  ;;  %v562_v16 = vsel %vm106_vm15, 1.0, %v637_v52 }
  0xa0   :  { %563 = vmatmul.mubr.msk.bf16.vlgmr.msra.gmra.mrb[0].mxu0 %vm115_vm0, %v172_v12  ;;  %564 = vmatmul.mubr.msk.bf16.vlgmr.msra.gmra.mrb[0].mxu1 %vm115_vm0, %v172_v12  ;;  %v125_v21 = vsel %vm115_vm0, %v562_v16, 0.0  ;;  %v173_v32 = vpack.c.bf16 %v562_v16, %v561_v61 }
  0xa1   :  { %264 = vmatpush1.bf16.msra.mxu0 %v164_v4  ;;  %310 = vmatpush1.bf16.msra.mxu1 %v166_v5 }
  0xa2   :  { %295 = vmatprep.mubr.bf16.mxu0 %v636_v0  ;;  %341 = vmatprep.mubr.bf16.mxu1 %v636_v0 }
  0xa3   :  { %126 = vadd.xlane.f32.xlu0 %v125_v21  ;;  %352 = vmatprep.subr.bf16.mxu0 %v169_v17 }
  0xa4   :  { %395 = vmatprep.subr.bf16.mxu1 %v171_v25 }
  0xa8   :  { %565 = vmatmul.mubr.msk.bf16.vlgmr.msra.gmra.mrb[4].mxu0 %vm115_vm0, %v172_v12  ;;  %566 = vmatmul.mubr.msk.bf16.vlgmr.msra.gmra.mrb[4].mxu1 %vm115_vm0, %v173_v32 }
  0xa9   :  { %353 = vmatpush1.bf16.msra.mxu0 %v168_v30  ;;  %396 = vmatpush1.bf16.msra.mxu1 %v170_v31 }
  0xaa   :  { %384 = vmatprep.mubr.bf16.mxu0 %v636_v0  ;;  %427 = vmatprep.mubr.bf16.mxu1 %v636_v0 }
  0xb0   :  { %567 = vmatmul.mubr.msk.bf16.vlgmr.msra.gmra.mrb[8].mxu0 %vm115_vm0, %v173_v32  ;;  %568 = vmatmul.mubr.msk.bf16.vlgmr.msra.gmra.mrb[8].mxu1 %vm115_vm0, %v173_v32 }
 0x128   :  { %v118_v33 = vpop.xlane.xlu0 %117 }
 0x129   :  { %v128_v35 = vadd.f32 1e-10, %v118_v33 }
 0x12b   :  { %577 = vrcp.f32 %v128_v35 }
 0x12c   :  { %v121_v34 = vpop.xlane.xlu1 %120  ;;  %v124_v36 = vpop.xlane.xlu0 %123 }
 0x12d   :  { %v129_v37 = vadd.f32 1e-10, %v121_v34  ;;  %v130_v39 = vadd.f32 1e-10, %v124_v36 }
 0x12f   :  { %579 = vrcp.f32 %v129_v37 }
 0x130   :  { %v127_v38 = vpop.xlane.xlu0 %126  ;;  %581 = vrcp.f32 %v130_v39 }
 0x131   :  { %v131_v40 = vadd.f32 1e-10, %v127_v38 }
 0x133   :  { %583 = vrcp.f32 %v131_v40 }
 0x135   :  { %v578_v41 = vpop.eup %577 }
 0x139   :  { %v580_v49 = vpop.eup %579 }
 0x13a   :  { %v582_v17 = vpop.eup %581 }
 0x173   :  { %v211_v42 = vpop.f32.mrb[0].mxu0  ;;  %v254_v43 = vpop.f32.mrb[0].mxu1 }
 0x174   :  { %v438_v0 = vmul.f32 %v578_v41, %v211_v42  ;;  %v440_v44 = vmul.f32 %v578_v41, %v254_v43  ;;  %v213_v45 = vpop.f32.mrb[1].mxu0  ;;  %v256_v48 = vpop.f32.mrb[1].mxu1 }
 0x175   :  { %v439_v50 = vmul.f32 %v578_v41, %v213_v45  ;;  %v441_v52 = vmul.f32 %v578_v41, %v256_v48  ;;  %v215_v53 = vpop.f32.mrb[2].mxu0  ;;  %v258_v55 = vpop.f32.mrb[2].mxu1 }
 0x176   :  { %v492_v58 = vsel %vm71_vm12, %v438_v0, %v709_v14  ;;  %v494_v61 = vsel %vm71_vm12, %v440_v44, %v717_v18  ;;  %v444_v62 = vmul.f32 %v580_v49, %v215_v53  ;;  %v446_v63 = vmul.f32 %v580_v49, %v258_v55  ;;  %v217_v3 = vpop.f32.mrb[3].mxu0  ;;  %v260_v4 = vpop.f32.mrb[3].mxu1 }
 0x177   :  { %516 = vst [vmem:[#allocation5] sm:$0xff] %v492_v58  ;;  %518 = vst [vmem:[#allocation5 + $0x10] sm:$0xff] %v494_v61  ;;  %v493_v5 = vsel %vm71_vm12, %v439_v50, %v699_v9  ;;  %v495_v8 = vsel %vm71_vm12, %v441_v52, %v703_v11  ;;  %v445_v12 = vmul.f32 %v580_v49, %v217_v3 }
 0x178   :  { %v447_v14 = vmul.f32 %v580_v49, %v260_v4  ;;  %517 = vst [vmem:[#allocation5 + $0x8] sm:$0xff] %v493_v5  ;;  %519 = vst [vmem:[#allocation5 + $0x18] sm:$0xff] %v495_v8  ;;  %v498_v18 = vsel %vm72_vm5, %v444_v62, %v711_v15  ;;  %v500_v16 = vsel %vm72_vm5, %v446_v63, %v719_v19  ;;  %v584_v19 = vpop.eup %583 }
 0x179   :  { %522 = vst [vmem:[#allocation5 + $0x30] sm:$0xff] %v498_v18  ;;  %524 = vst [vmem:[#allocation5 + $0x40] sm:$0xff] %v500_v16  ;;  %v499_v9 = vsel %vm72_vm5, %v445_v12, %v701_v10 }
 0x17a   :  { %v501_v11 = vsel %vm72_vm5, %v447_v14, %v707_v13  ;;  %523 = vst [vmem:[#allocation5 + $0x38] sm:$0xff] %v499_v9 }
 0x17b   :  { %525 = vst [vmem:[#allocation5 + $0x48] sm:$0xff] %v501_v11  ;;  %v297_v21 = vpop.f32.mrb[4].mxu0  ;;  %v343_v25 = vpop.f32.mrb[4].mxu1 }
 0x17c   :  { %v442_v15 = vmul.f32 %v578_v41, %v297_v21  ;;  %v450_v30 = vmul.f32 %v582_v17, %v343_v25  ;;  %v299_v31 = vpop.f32.mrb[5].mxu0  ;;  %v345_v32 = vpop.f32.mrb[5].mxu1 }
 0x17d   :  { %v443_v33 = vmul.f32 %v578_v41, %v299_v31  ;;  %v451_v34 = vmul.f32 %v582_v17, %v345_v32  ;;  %v301_v35 = vpop.f32.mrb[6].mxu0  ;;  %v347_v36 = vpop.f32.mrb[6].mxu1 }
 0x17e   :  { %v496_v10 = vsel %vm71_vm12, %v442_v15, %v783_v56  ;;  %v504_v13 = vsel %vm73_vm13, %v450_v30, %v792_v59  ;;  %v448_v37 = vmul.f32 %v580_v49, %v301_v35  ;;  %v456_v38 = vmul.f32 %v584_v19, %v347_v36  ;;  %v303_v39 = vpop.f32.mrb[7].mxu0  ;;  %v349_v40 = vpop.f32.mrb[7].mxu1 }
 0x17f   :  { %520 = vst [vmem:[#allocation5 + $0x20] sm:$0xff] %v496_v10  ;;  %528 = vst [vmem:[#allocation5 + $0x60] sm:$0xff] %v504_v13  ;;  %v497_v41 = vsel %vm71_vm12, %v443_v33, %v721_v20  ;;  %v505_v42 = vsel %vm73_vm13, %v451_v34, %v727_v23  ;;  %v449_v43 = vmul.f32 %v580_v49, %v303_v39 }
 0x180   :  { %v457_v56 = vmul.f32 %v584_v19, %v349_v40  ;;  %521 = vst [vmem:[#allocation5 + $0x28] sm:$0xff] %v497_v41  ;;  %529 = vst [vmem:[#allocation5 + $0x68] sm:$0xff] %v505_v42  ;;  %v502_v59 = vsel %vm72_vm5, %v448_v37, %v785_v57  ;;  %v510_v0 = vsel %vm74_vm6, %v456_v38, %v794_v60 }
 0x181   :  { %526 = vst [vmem:[#allocation5 + $0x50] sm:$0xff] %v502_v59  ;;  %534 = vst [vmem:[#allocation5 + $0x90] sm:$0xff] %v510_v0  ;;  %v503_v20 = vsel %vm72_vm5, %v449_v43, %v725_v22 }
 0x182   :  { %v511_v23 = vsel %vm74_vm6, %v457_v56, %v729_v24  ;;  %527 = vst [vmem:[#allocation5 + $0x58] sm:$0xff] %v503_v20 }
 0x183   :  { %535 = vst [vmem:[#allocation5 + $0x98] sm:$0xff] %v511_v23  ;;  %v386_v46 = vpop.f32.mrb[8].mxu0  ;;  %v429_v44 = vpop.f32.mrb[8].mxu1 }
 0x184   :  { %v452_v45 = vmul.f32 %v582_v17, %v386_v46  ;;  %v454_v57 = vmul.f32 %v582_v17, %v429_v44  ;;  %v388_v48 = vpop.f32.mrb[9].mxu0  ;;  %v431_v49 = vpop.f32.mrb[9].mxu1 }
 0x185   :  { %v453_v50 = vmul.f32 %v582_v17, %v388_v48  ;;  %v455_v60 = vmul.f32 %v582_v17, %v431_v49  ;;  %v390_v52 = vpop.f32.mrb[10].mxu0  ;;  %v433_v53 = vpop.f32.mrb[10].mxu1 }
 0x186   :  { %v506_v22 = vsel %vm73_vm13, %v452_v45, %v831_v26  ;;  %v508_v24 = vsel %vm73_vm13, %v454_v57, %v837_v28  ;;  %v458_v51 = vmul.f32 %v584_v19, %v390_v52  ;;  %v460_v55 = vmul.f32 %v584_v19, %v433_v53  ;;  %v392_v58 = vpop.f32.mrb[11].mxu0  ;;  %v435_v61 = vpop.f32.mrb[11].mxu1 }
 0x187   :  { %530 = vst [vmem:[#allocation5 + $0x70] sm:$0xff] %v506_v22  ;;  %532 = vst [vmem:[#allocation5 + $0x80] sm:$0xff] %v508_v24  ;;  %v507_v62 = vsel %vm73_vm13, %v453_v50, %v806_v1  ;;  %v509_v63 = vsel %vm73_vm13, %v455_v60, %v817_v6  ;;  %v459_v3 = vmul.f32 %v584_v19, %v392_v58 }
 0x188   :  { %v461_v26 = vmul.f32 %v584_v19, %v435_v61  ;;  %531 = vst [vmem:[#allocation5 + $0x78] sm:$0xff] %v507_v62  ;;  %533 = vst [vmem:[#allocation5 + $0x88] sm:$0xff] %v509_v63  ;;  %v512_v28 = vsel %vm74_vm6, %v458_v51, %v835_v27  ;;  %v514_v4 = vsel %vm74_vm6, %v460_v55, %v839_v29 }
 0x189   :  { %536 = vst [vmem:[#allocation5 + $0xa0] sm:$0xff] %v512_v28  ;;  %538 = vst [vmem:[#allocation5 + $0xb0] sm:$0xff] %v514_v4  ;;  %v513_v47 = vsel %vm74_vm6, %v459_v3, %v808_v2 }
 0x18a   :  { %v515_v1 = vsel %vm74_vm6, %v461_v26, %v819_v7  ;;  %537 = vst [vmem:[#allocation5 + $0xa8] sm:$0xff] %v513_v47 }
 0x18b   :  { %539 = vst [vmem:[#allocation5 + $0xb8] sm:$0xff] %v515_v1 }
 0x18c   :  { %618 = shalt.err (!%p615_p12)
}
 0x18d   :  { %s619_s24 = scalar_lea.hbm %s942_s4, 3072 }
 0x18e   :  { %p620_p13 = scmp.ne.s32.totalorder %s942_s4, %s619_s24  ;;  %p623_p0 = scmp.lt.u32.totalorder %s619_s24, %s942_s4 }
 0x190   :  { %p625_p1 = pnand %p623_p0, %p620_p13 }
 0x192   :  { %628 = shalt.err (!%p625_p1)
}
 0x193   :  { %551 = dma.vmem_to_hbm [thread:$0]  %s546_s2, 3072, %s942_s4, [#allocation4], %s634_s25, %s634_s25, %s635_s26  }
 0x194   :  { %631 = dma.done.wait [#allocation4], 3072  }
 0x195   :  { %632 = vsyncadd [#allocation4], 4294964224 }
 0x196   :  { %555 = vsyncpa [#allocation3], 1 }
 0x197   :  { %556 = vsyncpa [#allocation4], 1 }

</bundles_post_ra>
